<compile_context>
chip_gen: v7x
topology: tpu7x:2x2x1
jax: 0.10.0
libtpu: 0.0.40
codegen_flags: <defaults>
</compile_context>

<pallas_src>
import jax
import jax.numpy as jnp
from jax.experimental import pallas as pl
from jax.experimental.pallas import tpu as pltpu


def build_pe(d_model: int, max_seq_length: int) -> jnp.ndarray:
    """Deterministic buffer setup (mirrors nn.Module.__init__, quirk included)."""
    assert max_seq_length % 2 == 0, "PyTorch code requires even max_seq_length"
    pos = jnp.arange(max_seq_length, dtype=jnp.float32)
    denom = jnp.power(jnp.float32(10000.0),
                      jnp.arange(d_model, dtype=jnp.float32) / jnp.float32(d_model))
    pe = pos[:, None] / denom[None, :]                      # (L, D) float32
    even = jnp.arange(0, max_seq_length, 2)
    odd = jnp.arange(1, max_seq_length, 2)
    sin_even = jnp.sin(pe[even, 0])
    pe = pe.at[even, 0].set(sin_even)                       # pe[~mask] = sin(pe[~mask])
    pe = pe.at[odd, 0].set(jnp.cos(sin_even))               # pe[mask]  = cos(pe[~mask])
    return pe


def _target_bytes() -> int:
    """Generation-dependent block-size target (pure HBM stream -> bigger is better)."""
    try:
        kind = jax.devices()[0].device_kind.lower()
    except Exception:
        return 4 << 20
    if "v5" in kind:
        return 2 << 20          # ~0.8 TB/s: 2 MiB already <10% step overhead
    if "v6" in kind:
        return 8 << 20          # 128 MiB VMEM, plentiful
    return 4 << 20              # v7x (64 MiB VMEM) / unknown: 4 MiB is a safe middle


def _choose_tiles(B: int, S: int, D: int, itemsize: int, target_bytes: int):
    """Pick (tB, tS): seq rows multiple of 8 (or full S); batch rows fill the budget."""
    bytes_per_row = max(1, D * itemsize)
    rows = max(8, (target_bytes // bytes_per_row) // 8 * 8)
    if rows < S:
        return 1, rows                                   # tile the sequence
    # whole sequence fits in one block -> pack several batch rows per block
    blk = S * bytes_per_row
    tB = max(1, min(B, target_bytes // max(1, blk)))
    return tB, S


def _make_kernel(*, keep_prob: float, training: bool, tB: int, tS: int, S: int, D: int):
    use_dropout = training and keep_prob < 1.0
    if use_dropout:
        inv_keep = float(1.0 / keep_prob)                          # hoisted constant
        thresh = min(int(keep_prob * 4294967296.0), 4294967295)   # uint32 keep threshold

    def kernel(seed_ref, x_ref, pe_ref, o_ref):
        # hot path: broadcasted elementwise add (VPU), (tB,tS,D) + (tS,D)
        y = x_ref[...] + pe_ref[...]
        if use_dropout:
            # TODO(synk): dropout mask is a counter-based hash (murmur3 fmix32) of
            # the global element index + seed — valid inverted dropout, but it
            # cannot match torch's RNG stream bit-for-bit.
            shp = y.shape
            bi = jax.lax.broadcasted_iota(jnp.int32, shp, 0) + pl.program_id(1) * tB
            si = jax.lax.broadcasted_iota(jnp.int32, shp, 1) + pl.program_id(0) * tS
            di = jax.lax.broadcasted_iota(jnp.int32, shp, 2)
            idx = ((bi * S + si) * D + di).astype(jnp.uint32)      # global element id
            s = seed_ref[0].astype(jnp.uint32) * jnp.uint32(0x9E3779B1)  # seed pre-mix
            h = idx ^ s
            h = h ^ (h >> 16)
            h = h * jnp.uint32(0x85EBCA6B)
            h = h ^ (h >> 13)
            h = h * jnp.uint32(0xC2B2AE35)
            h = h ^ (h >> 16)
            keep = h < jnp.uint32(thresh)                           # raw uint32 compare
            y = jnp.where(keep, y * jnp.asarray(inv_keep, y.dtype),
                          jnp.zeros((), y.dtype))
        o_ref[...] = y.astype(o_ref.dtype)

    return kernel


def positional_encoding_forward(x, pe, *, dropout_p: float = 0.1,
                                training: bool = False, seed: int = 0):
    """x: (B, S, D); pe: (max_seq_length, D) float32 (built by build_pe)."""
    B, S, D = x.shape
    assert pe.shape[0] >= S and pe.shape[1] == D

    # Ship PE in the activation dtype (halves PE HBM traffic for bf16 inputs).
    pe_in = pe if pe.dtype == x.dtype else pe.astype(x.dtype)

    itemsize = jnp.dtype(x.dtype).itemsize
    tB, tS = _choose_tiles(B, S, D, itemsize, _target_bytes())

    # Block-shape legality for the (8,*) rule on pe: if the seq tile equals S but
    # S is not a multiple of 8 and not pe's full extent, fall back to slicing.
    if tS == S and S % 8 != 0 and S != pe_in.shape[0]:
        pe_in = pe_in[:S]

    num_s = pl.cdiv(S, tS)
    num_b = pl.cdiv(B, tB)
    # v7x megacore: make sure the grid has >=2 iterations when possible.
    if num_s * num_b < 2 and B >= 2:
        tB = pl.cdiv(B, 2)
        num_b = pl.cdiv(B, tB)

    # VMEM budget from the actual double-buffered footprint (x, out, pe) + slack.
    blk_x = tB * tS * D * itemsize
    blk_pe = tS * D * jnp.dtype(pe_in.dtype).itemsize
    need = 2 * (2 * blk_x + blk_pe)
    vmem_limit = int(min(48 << 20, max(16 << 20, int(need * 1.5))))

    kernel = _make_kernel(keep_prob=1.0 - dropout_p, training=training,
                          tB=tB, tS=tS, S=S, D=D)
    seed_arr = jnp.array([seed], dtype=jnp.int32)

    return pl.pallas_call(
        kernel,
        out_shape=jax.ShapeDtypeStruct((B, S, D), x.dtype),
        grid_spec=pltpu.PrefetchScalarGridSpec(
            num_scalar_prefetch=1,
            # batch is the INNER axis -> PE block index constant across it, so
            # the shared PE tile stays resident (no re-DMA per batch block).
            grid=(num_s, num_b),
            in_specs=[
                pl.BlockSpec((tB, tS, D), lambda s, b, seed: (b, s, 0)),  # x tile
                pl.BlockSpec((tS, D), lambda s, b, seed: (s, 0)),         # PE tile
            ],
            out_specs=pl.BlockSpec((tB, tS, D), lambda s, b, seed: (b, s, 0)),
        ),
        compiler_params=pltpu.CompilerParams(
            dimension_semantics=("parallel", "parallel"),
            vmem_limit_bytes=vmem_limit,
        ),
    )(seed_arr, x, pe_in)


if __name__ == "__main__":
    B, S, D = 2, 8, 32
    MAX_LEN = 64

    key = jax.random.PRNGKey(0)
    x = jax.random.normal(key, (B, S, D), dtype=jnp.float32)

    pe = build_pe(D, MAX_LEN)
    ref = x + pe[:S][None, :, :]

    # eval-mode forward (dropout = identity), deterministic check
    out = positional_encoding_forward(x, pe, dropout_p=0.1, training=False)
    out = jax.block_until_ready(out)
    assert out.shape == (B, S, D)
    assert out.dtype == jnp.float32
    assert jnp.allclose(out, ref, atol=1e-6, rtol=1e-6)

    # training-mode forward: every element must be either dropped (0) or the
    # inverted-dropout-scaled reference value, and some (but not all) dropped.
    keep_prob = 0.9
    out_tr = positional_encoding_forward(x, pe, dropout_p=0.1, training=True, seed=123)
    out_tr = jax.block_until_ready(out_tr)
    scaled = ref * (1.0 / keep_prob)
    is_zero = jnp.isclose(out_tr, 0.0, atol=1e-6)
    is_scaled = jnp.isclose(out_tr, scaled, atol=1e-5, rtol=1e-4)
    assert out_tr.shape == (B, S, D)
    assert bool(jnp.all(is_zero | is_scaled))
    n_drop = int(jnp.sum(is_zero & ~is_scaled))
    assert 0 < n_drop < B * S * D

    print("KERNEL_OK")
</pallas_src>

<mosaic_0001>
module attributes {stable_mosaic.version = 11 : i64} {
  func.func @kernel(%arg0: i32, %arg1: i32, %arg2: memref<1xi32, #tpu.memory_space<smem>>, %arg3: memref<1x8x32xf32, #tpu.memory_space<vmem>>, %arg4: memref<8x32xf32, #tpu.memory_space<vmem>>, %arg5: memref<1x8x32xf32, #tpu.memory_space<vmem>>) attributes {dimension_semantics = [#tpu.dimension_semantics<parallel>, #tpu.dimension_semantics<parallel>], iteration_bounds = array<i64: 1, 2>, scalar_prefetch = 1 : i64, scratch_operands = 0 : i64, tpu.core_type = #tpu.core_type<tc>, window_params = [{transform_indices = @transform_0, window_bounds = array<i64: 1, 8, 32>}, {transform_indices = @transform_1, window_bounds = array<i64: 8, 32>}, {transform_indices = @transform_2, window_bounds = array<i64: 1, 8, 32>}]} {
    %c0 = arith.constant 0 : index
    %c0_0 = arith.constant 0 : index
    %c0_1 = arith.constant 0 : index
    %0 = vector.load %arg3[%c0, %c0_0, %c0_1] : memref<1x8x32xf32, #tpu.memory_space<vmem>>, vector<1x8x32xf32>
    %c0_2 = arith.constant 0 : index
    %c0_3 = arith.constant 0 : index
    %1 = vector.load %arg4[%c0_2, %c0_3] : memref<8x32xf32, #tpu.memory_space<vmem>>, vector<8x32xf32>
    %2 = vector.shape_cast %1 : vector<8x32xf32> to vector<1x8x32xf32>
    %3 = arith.addf %0, %2 : vector<1x8x32xf32>
    %c0_4 = arith.constant 0 : index
    %c0_5 = arith.constant 0 : index
    %c0_6 = arith.constant 0 : index
    %4 = vector.load %arg5[%c0_4, %c0_5, %c0_6] : memref<1x8x32xf32, #tpu.memory_space<vmem>>, vector<1x8x32xf32>
    tpu.vector_store %arg5[%c0_4, %c0_5, %c0_6], %3 {strides = array<i32>} : memref<1x8x32xf32, #tpu.memory_space<vmem>>, vector<1x8x32xf32>,
    return
  }
  func.func @transform_0(%arg0: i32, %arg1: i32, %arg2: memref<1xi32, #tpu.memory_space<smem>>) -> (i32, i32, i32) {
    %c0_i32 = arith.constant 0 : i32
    %c0_i32_0 = arith.constant 0 : i32
    return %arg1, %arg0, %c0_i32 : i32, i32, i32
  }
  func.func @transform_1(%arg0: i32, %arg1: i32, %arg2: memref<1xi32, #tpu.memory_space<smem>>) -> (i32, i32) {
    %c0_i32 = arith.constant 0 : i32
    %c0_i32_0 = arith.constant 0 : i32
    return %arg0, %c0_i32 : i32, i32
  }
  func.func @transform_2(%arg0: i32, %arg1: i32, %arg2: memref<1xi32, #tpu.memory_space<smem>>) -> (i32, i32, i32) {
    %c0_i32 = arith.constant 0 : i32
    %c0_i32_0 = arith.constant 0 : i32
    return %arg1, %arg0, %c0_i32 : i32, i32, i32
  }
}

</mosaic_0001>

<bundles_post_ra>
// kernel: tpu_custom_call.1
= control target key start
LH: loop header
LB: loop body
LE: loop exit
PB: predicated region body
PF: predicated region fallthrough
CT: control target
= control target key end

     0   :  { %9 = vsyncpa [#allocation5], 0  ;;  %s572_s0 = inlined_call_operand.<no memory space> [shape: s32[1], index: 0, kind: input, shape index: {}]   ;;  %s573_s1 = inlined_call_operand.vmem [shape: f32[2,8,32], index: 1, kind: input, shape index: {}]   ;;  %s574_s2 = inlined_call_operand.vmem [shape: f32[64,32], index: 2, kind: input, shape index: {}]   ;;  %s575_s3 = inlined_call_operand.hbm [shape: f32[2,8,32], index: 3, kind: output, shape index: {}]  }
   0x1   :  { %11 = vsyncpa [#allocation5 + $0x1], 0  ;;  %s457_s12 = smov 0   ;;  %s459_s13 = smov 0  }
   0x2   :  { %s461_s14 = smov 0   ;;  %s463_s15 = smov 0  }
   0x3   :  { %s465_s0 = smov 0   ;;  %s467_s16 = smov 0  }
   0x4 LB: > { %s289_s17 = sadd.s32 4294967295, %s434_s16   ;;  %s290_s18 = sadd.s32 4294967294, %s434_s16   ;;  %s434_s16 = sphi %s467_s16, %s17_s16   ;;  %s430_s0 = sphi %s465_s0, %s582_s0   ;;  %s426_s15 = sphi %s463_s15, %s581_s15   ;;  %s422_s14 = sphi %s461_s14, %s580_s14   ;;  %s418_s13 = sphi %s459_s13, %s579_s13   ;;  %s414_s12 = sphi %s457_s12, %s578_s12  }
   0x5   : > { %s26_s19 = sadd.s32 1, %s430_s0  ;;  %s92_s20 = sadd.s32 1, %s422_s14 }
   0x6   : > { %p27_p0 = scmp.ge.s32.totalorder %s26_s19, 2  ;;  %p102_p1 = scmp.ne.s32.totalorder %s422_s14, %s418_s13 }
   0x7   : > { %p103_p2 = scmp.eq.s32.totalorder %s289_s17, 1  ;;  %p108_p3 = scmp.ne.s32.totalorder %s418_s13, %s414_s12 }
   0x8   : > { %s584_s19 = smov (%p27_p0, %s26_s19), 0  ;;  %p109_p5 = scmp.eq.s32.totalorder %s290_s18, 1 }
   0x9   : > { %p497_p4 = por %p103_p2, %p102_p1  ;;  %s87_s22 = ssub.s32 %s430_s0, %s584_s19 }
   0xa   : > { %p294_p6 = scmp.ge.s32.totalorder %s434_s16, 1  ;;  %p90_p7 = scmp.eq.s32.totalorder %s87_s22, 0 }
   0xb   : > { %p504_p8 = por %p109_p5, %p108_p3  ;;  %p144_p9 = scmp.lt.s32.totalorder %s434_s16, 3 }
   0xc   : > { %s510_s24 = scalar_select %p90_p7, %s422_s14, %s92_s20  }
   0xd   : > { %p145_p10 = pnand %p294_p6, %p144_p9 }
   0xe   : > { %s169_s25 = sand.u32 (!%p145_p10), 1, %s418_s13   ;;  %p172_p11 = scmp.lt.s32.totalorder (!%p145_p10), %s426_s15, 1  ;;  %v184_v0 = vld [vmem:[%s574_s2] sm:$0xff] (!%p145_p10)  ;;  %vm186_vm0 = vcmask (!%p145_p10), 261120  }
   0xf   : > { %148 = sbr.rel (%p145_p10) target bundleno = 43 (0x2b), region = 28  ;;  %s295_s26 = sshll.u32 (!%p145_p10), %s169_s25, 3 }
  0x10   : > { %s298_s28 = sshll.u32 (!%p145_p10), %s426_s15, 7  ;;  %s171_s5 = scalar_lea.vmem (!%p145_p10), [#allocation4], %s295_s26 }
  0x11   : > { %s203_s6 = sshll.u32 (!%p145_p10), %s171_s5, 4  ;;  %s189_s17 = scalar_lea.sflag (!%p145_p10), [#allocation5], %s169_s25  ;;  %s522_s6 = int_to_ptr.vmem [resolvable:$true] %s203_s6 }
  0x12   : > { %s356_s18 = scalar_lea.vmem (!%p145_p10), %s522_s6, 128  ;;  %s436_s20 = smov (!%p145_p10), [#allocation4]  }
  0x13   : > { %p357_p12 = scmp.ne.s32.totalorder (!%p145_p10), %s522_s6, %s356_s18  ;;  %s360_s22 = sshll.u32 (!%p145_p10), %s436_s20, 4  ;;  %s361_s22 = int_to_ptr.vmem [resolvable:$false] %s360_s22 }
  0x14   : > { %s362_s26 = scalar_lea.vmem (!%p145_p10), %s361_s22, 256  ;;  %p363_p1 = scmp.lt.s32.totalorder (!%p145_p10), %s522_s6, %s361_s22 }
  0x15   : > { %p358_p13 = pnand (!%p145_p10), %p357_p12, %p497_p4  ;;  %p364_p2 = scmp.lt.s32.totalorder (!%p145_p10), %s362_s26, %s356_s18 }
  0x16   : > { %s173_s27 = scalar_select %p172_p11, %s426_s15, 1 }
  0x17   : > { %s527_s15 = scalar_lea.hbm %s575_s3, %s298_s28  ;;  %p359_p0 = pneg %p358_p13 }
  0x18   : > { %s296_s29 = sshll.u32 %s173_s27, 3  ;;  %p365_p3 = por %p364_p2, %p363_p1 }
  0x19   : > { %s178_s9 = scalar_lea.vmem %s573_s1, %s296_s29 }
  0x1a   : > { %v183_v1 = vld [vmem:[%s178_s9] sm:$0xff]  ;;  %p366_p5 = pnand %p365_p3, %p359_p0 }
  0x1b   : > { %v185_v2 = vadd.f32 %v184_v0, %v183_v1 }
  0x1d   : > { %187 = vst.msk [vmem:[%s171_s5] sm:$0xff] %vm186_vm0, %v185_v2 }
  0x1e   : > { %369 = shalt.err (!%p366_p5)
}
  0x1f   : > { %s370_s25 = scalar_lea.hbm %s527_s15, 128  ;;  %s374_s29 = scalar_lea.hbm %s575_s3, 256 }
  0x20   : > { %p371_p6 = scmp.ne.s32.totalorder %s527_s15, %s370_s25  ;;  %p375_p10 = scmp.lt.u32.totalorder %s527_s15, %s575_s3 }
  0x21   : > { %p376_p11 = scmp.lt.u32.totalorder %s374_s29, %s370_s25  ;;  %p378_p13 = scmp.lt.u32.totalorder %s370_s25, %s527_s15 }
  0x22   : > { %p372_p7 = pnand %p371_p6, %p497_p4 }
  0x23   : > { %p377_p12 = por %p376_p11, %p375_p10 }
  0x24   : > { %p373_p9 = pneg %p372_p7 }
  0x25   : > { %p379_p0 = por %p378_p13, %p377_p12 }
  0x27   : > { %p380_p1 = pnand %p379_p0, %p373_p9 }
  0x29   : > { %383 = shalt.err (!%p380_p1)
}
  0x2a   : > { %301 = dma.vmem_to_hbm [thread:$0]  (%p497_p4), %s522_s6, 128, %s527_s15, %s189_s17  }
  0x2b PF: > { %p307_p2 = scmp.ge.s32.totalorder %s434_s16, 2  ;;  %s215_s5 = sand.u32 1, %s414_s12  }
  0x2c   : > { %s216_s7 = scalar_lea.sflag [#allocation5], %s215_s5 }
  0x2d   : > { %p304_p3 = pnand %p307_p2, %p504_p8 }
  0x2f   : > { %409 = dma.done.wait (!%p304_p3), %s216_s7, 128  }
  0x30   : > { %411 = vsyncadd (!%p304_p3), %s216_s7, 4294967168  ;;  %s17_s16 = sadd.s32 1, %s434_s16   ;;  %s578_s12 = smov %s418_s13 }
  0x31   : > { %p14_p5 = scmp.ge.s32.totalorder %s17_s16, 4   ;;  %s579_s13 = smov %s422_s14 }
  0x32   : > { %s580_s14 = smov %s510_s24  ;;  %s581_s15 = smov %s430_s0 }
  0x33   : > { %s582_s0 = smov %s584_s19  ;;  %16 = sbr.rel (!%p14_p5) target bundleno = 4 (0x4), region = 66 }
  0x3a   :  { %221 = vsyncpa [#allocation5], 1 }
  0x3b   :  { %223 = vsyncpa [#allocation5 + $0x1], 1 }

</bundles_post_ra>
